<compile_context>
chip_gen: v6e
topology: v6e:2x2x1
jax: 0.10.0
libtpu: 0.0.40
codegen_flags: <defaults>
</compile_context>

<pallas_src>
import jax
import jax.numpy as jnp
from jax import lax
from jax.experimental import pallas as pl
from jax.experimental.pallas import tpu as pltpu

BN_EPS = 1e-5
SOFTPLUS_THRESHOLD = 20.0  # matches torch.nn.functional.softplus default


def downsample_kernel(w_ref, pts_ref, par_ref, o_ref):
    # w_ref   : (Cout, K)  bf16   conv weight reshaped (Cout, Cin*3*3)
    # pts_ref : (K, M)     bf16   im2col patches, M = N*Ho*Wo on the lane axis
    # par_ref : (Cout, 2)  f32    [:, 0] = gamma, [:, 1] = beta
    # o_ref   : (Cout, M)  f32    lane-dense output slab
    m = o_ref.shape[1]

    # ---- Conv2d(k=3, s=2, p=1) as one MXU matmul, f32 accumulation ----
    acc = jnp.dot(w_ref[...], pts_ref[...], preferred_element_type=jnp.float32)

    # ---- BatchNorm2d, training-mode batch stats, one pass over acc ----
    inv_m = 1.0 / float(m)
    s = jnp.sum(acc, axis=1, keepdims=True)
    ss = jnp.sum(acc * acc, axis=1, keepdims=True)
    mean = s * inv_m
    var = jnp.maximum(ss * inv_m - mean * mean, 0.0)  # biased variance

    par = par_ref[...]
    gamma = par[:, 0:1]
    beta = par[:, 1:2]
    scale = gamma * lax.rsqrt(var + BN_EPS)
    shift = beta - mean * scale
    y = acc * scale + shift  # single fma per element

    # ---- Mish: y * tanh(softplus(y)) ----
    # tanh(softplus(y)) = ((1+e^y)^2 - 1) / ((1+e^y)^2 + 1); clamp at the
    # softplus threshold (for y > 20 the factor is 1.0 in f32, i.e. out ~= y).
    e = jnp.exp(jnp.minimum(y, SOFTPLUS_THRESHOLD))
    s1 = 1.0 + e
    s2 = s1 * s1
    t = (s2 - 1.0) * pl.reciprocal(s2 + 1.0, approx=True)
    o_ref[...] = (y * t).astype(o_ref.dtype)


def downsample_forward(x_nchw, weight_oihw, bias, gamma, beta):
    """x_nchw: (N, Cin, H, W) f32. Returns (N, 2*Cin, H//2, W//2) NCHW f32."""
    n, cin, h, w = x_nchw.shape
    cout = weight_oihw.shape[0]
    ho = (h + 2 * 1 - 3) // 2 + 1
    wo = (w + 2 * 1 - 3) // 2 + 1
    m = n * ho * wo
    k = cin * 9

    # Conv bias is mathematically dead under train-mode BatchNorm (cancelled
    # by the mean subtraction) -> not passed to the kernel at all.
    del bias

    # ---- wrapper-side im2col (stride-2 extraction stays in XLA) ----
    x_pad = jnp.pad(x_nchw, ((0, 0), (0, 0), (1, 1), (1, 1)))
    patches = []
    for kh in range(3):
        for kw in range(3):
            patches.append(
                lax.slice(
                    x_pad,
                    (0, 0, kh, kw),
                    (n, cin, kh + 2 * (ho - 1) + 1, kw + 2 * (wo - 1) + 1),
                    (1, 1, 2, 2),
                )  # (N, Cin, Ho, Wo)
            )
    pts = jnp.stack(patches, axis=0)                # (9, N, Cin, Ho, Wo)
    pts = jnp.transpose(pts, (2, 0, 1, 3, 4))       # (Cin, 9, N, Ho, Wo)
    pts = pts.reshape(k, m).astype(jnp.bfloat16)    # (K, M), channel-major

    # weight OIHW -> (Cout, Cin*3*3); flatten order matches the patch packing.
    w2 = weight_oihw.reshape(cout, k).astype(jnp.bfloat16)

    # single consolidated per-channel parameter input: [gamma | beta]
    params = jnp.stack(
        [gamma.astype(jnp.float32), beta.astype(jnp.float32)], axis=1
    )  # (Cout, 2)

    out_cm = pl.pallas_call(
        downsample_kernel,
        out_shape=jax.ShapeDtypeStruct((cout, m), jnp.float32),
        grid=(1,),  # tiny problem: fully VMEM-resident (BN needs global stats)
        in_specs=[
            pl.BlockSpec((cout, k), lambda i: (0, 0)),
            pl.BlockSpec((k, m), lambda i: (0, 0)),
            pl.BlockSpec((cout, 2), lambda i: (0, 0)),
        ],
        out_specs=pl.BlockSpec((cout, m), lambda i: (0, 0)),
        compiler_params=pltpu.CompilerParams(
            dimension_semantics=("arbitrary",)
        ),
    )(w2, pts, params)

    # (Cout, N*Ho*Wo) -> (N, Cout, Ho, Wo)
    return jnp.transpose(out_cm.reshape(cout, n, ho, wo), (1, 0, 2, 3))


if __name__ == "__main__":
    key = jax.random.PRNGKey(0)
    k_x, k_w, k_b = jax.random.split(key, 3)

    # Downsample(in_c=4): Conv2d(4, 8, k=3, s=2, p=1) + BatchNorm2d(8) + Mish
    N, Cin, H, W = 2, 4, 16, 16
    Cout = Cin * 2

    x = jax.random.normal(k_x, (N, Cin, H, W), dtype=jnp.float32)
    conv_w = 0.1 * jax.random.normal(k_w, (Cout, Cin, 3, 3), dtype=jnp.float32)
    conv_b = 0.05 * jax.random.normal(k_b, (Cout,), dtype=jnp.float32)
    bn_gamma = jnp.ones((Cout,), dtype=jnp.float32)   # nn.BatchNorm2d default
    bn_beta = jnp.zeros((Cout,), dtype=jnp.float32)   # nn.BatchNorm2d default

    out = downsample_forward(x, conv_w, conv_b, bn_gamma, bn_beta)
    jax.block_until_ready(out)

    assert out.shape == (N, Cout, H // 2, W // 2), out.shape
    assert out.dtype == jnp.float32
    print("KERNEL_OK")
</pallas_src>

<mosaic_0001>
module attributes {stable_mosaic.version = 11 : i64} {
  func.func @downsample_kernel(%arg0: i32, %arg1: memref<8x36xbf16, #tpu.memory_space<vmem>>, %arg2: memref<36x128xbf16, #tpu.memory_space<vmem>>, %arg3: memref<8x2xf32, #tpu.memory_space<vmem>>, %arg4: memref<8x128xf32, #tpu.memory_space<vmem>>) attributes {dimension_semantics = [#tpu.dimension_semantics<arbitrary>], iteration_bounds = array<i64: 1>, scalar_prefetch = 0 : i64, scratch_operands = 0 : i64, tpu.core_type = #tpu.core_type<tc>, window_params = [{pipeline_mode = #tpu.pipeline_mode<synchronous>, transform_indices = @transform_0, window_bounds = array<i64: 8, 36>}, {pipeline_mode = #tpu.pipeline_mode<synchronous>, transform_indices = @transform_1, window_bounds = array<i64: 36, 128>}, {pipeline_mode = #tpu.pipeline_mode<synchronous>, transform_indices = @transform_2, window_bounds = array<i64: 8, 2>}, {pipeline_mode = #tpu.pipeline_mode<synchronous>, transform_indices = @transform_3, window_bounds = array<i64: 8, 128>}]} {
    %c0 = arith.constant 0 : index
    %c0_0 = arith.constant 0 : index
    %0 = vector.load %arg1[%c0, %c0_0] : memref<8x36xbf16, #tpu.memory_space<vmem>>, vector<8x36xbf16>
    %c0_1 = arith.constant 0 : index
    %c0_2 = arith.constant 0 : index
    %1 = vector.load %arg2[%c0_1, %c0_2] : memref<36x128xbf16, #tpu.memory_space<vmem>>, vector<36x128xbf16>
    %cst = arith.constant dense<0.000000e+00> : vector<8x128xf32>
    %2 = tpu.matmul %0, %1, %cst {dimension_numbers = #tpu.dot_dimension_numbers<[1], [0], [0], [1], [0, 0, 1, 1], [], []>} : vector<8x36xbf16>, vector<36x128xbf16>, vector<8x128xf32> -> vector<8x128xf32>
    %cst_3 = arith.constant dense<0.000000e+00> : vector<8xf32>
    %3 = vector.multi_reduction <add>, %2, %cst_3 [1] : vector<8x128xf32> to vector<8xf32>
    %4 = vector.shape_cast %3 : vector<8xf32> to vector<8x1xf32>
    %5 = arith.mulf %2, %2 : vector<8x128xf32>
    %cst_4 = arith.constant dense<0.000000e+00> : vector<8xf32>
    %6 = vector.multi_reduction <add>, %5, %cst_4 [1] : vector<8x128xf32> to vector<8xf32>
    %7 = vector.shape_cast %6 : vector<8xf32> to vector<8x1xf32>
    %cst_5 = arith.constant 7.812500e-03 : f32
    %8 = vector.broadcast %cst_5 : f32 to vector<8x1xf32>
    %9 = arith.mulf %4, %8 : vector<8x1xf32>
    %cst_6 = arith.constant 7.812500e-03 : f32
    %10 = vector.broadcast %cst_6 : f32 to vector<8x1xf32>
    %11 = arith.mulf %7, %10 : vector<8x1xf32>
    %12 = arith.mulf %9, %9 : vector<8x1xf32>
    %13 = arith.subf %11, %12 : vector<8x1xf32>
    %cst_7 = arith.constant 0.000000e+00 : f32
    %14 = vector.broadcast %cst_7 : f32 to vector<8x1xf32>
    %15 = arith.maximumf %13, %14 : vector<8x1xf32>
    %c0_8 = arith.constant 0 : index
    %c0_9 = arith.constant 0 : index
    %16 = vector.load %arg3[%c0_8, %c0_9] : memref<8x2xf32, #tpu.memory_space<vmem>>, vector<8x2xf32>
    %17 = vector.extract_strided_slice %16 {offsets = [0, 0], sizes = [8, 1], strides = [1, 1]} : vector<8x2xf32> to vector<8x1xf32>
    %18 = vector.extract_strided_slice %16 {offsets = [0, 1], sizes = [8, 1], strides = [1, 1]} : vector<8x2xf32> to vector<8x1xf32>
    %cst_10 = arith.constant 9.99999974E-6 : f32
    %19 = vector.broadcast %cst_10 : f32 to vector<8x1xf32>
    %20 = arith.addf %15, %19 : vector<8x1xf32>
    %21 = math.rsqrt %20 : vector<8x1xf32>
    %22 = arith.mulf %17, %21 : vector<8x1xf32>
    %23 = arith.mulf %9, %22 : vector<8x1xf32>
    %24 = arith.subf %18, %23 : vector<8x1xf32>
    %25 = vector.broadcast %22 : vector<8x1xf32> to vector<8x128xf32>
    %26 = arith.mulf %2, %25 : vector<8x128xf32>
    %27 = vector.broadcast %24 : vector<8x1xf32> to vector<8x128xf32>
    %28 = arith.addf %26, %27 : vector<8x128xf32>
    %cst_11 = arith.constant 2.000000e+01 : f32
    %29 = vector.broadcast %cst_11 : f32 to vector<8x128xf32>
    %30 = arith.minimumf %28, %29 : vector<8x128xf32>
    %31 = math.exp %30 : vector<8x128xf32>
    %cst_12 = arith.constant 1.000000e+00 : f32
    %32 = vector.broadcast %cst_12 : f32 to vector<8x128xf32>
    %33 = arith.addf %32, %31 : vector<8x128xf32>
    %34 = arith.mulf %33, %33 : vector<8x128xf32>
    %cst_13 = arith.constant 1.000000e+00 : f32
    %35 = vector.broadcast %cst_13 : f32 to vector<8x128xf32>
    %36 = arith.subf %34, %35 : vector<8x128xf32>
    %cst_14 = arith.constant 1.000000e+00 : f32
    %37 = vector.broadcast %cst_14 : f32 to vector<8x128xf32>
    %38 = arith.addf %34, %37 : vector<8x128xf32>
    %39 = tpu.reciprocal %38 {approx = true} : vector<8x128xf32> -> vector<8x128xf32>
    %40 = arith.mulf %36, %39 : vector<8x128xf32>
    %41 = arith.mulf %28, %40 : vector<8x128xf32>
    %c0_15 = arith.constant 0 : index
    %c0_16 = arith.constant 0 : index
    %42 = vector.load %arg4[%c0_15, %c0_16] : memref<8x128xf32, #tpu.memory_space<vmem>>, vector<8x128xf32>
    tpu.vector_store %arg4[%c0_15, %c0_16], %41 {strides = array<i32>} : memref<8x128xf32, #tpu.memory_space<vmem>>, vector<8x128xf32>,
    return
  }
  func.func @transform_0(%arg0: i32) -> (i32, i32) {
    %c0_i32 = arith.constant 0 : i32
    %c0_i32_0 = arith.constant 0 : i32
    %c0_i32_1 = arith.constant 0 : i32
    return %c0_i32, %c0_i32_0 : i32, i32
  }
  func.func @transform_1(%arg0: i32) -> (i32, i32) {
    %c0_i32 = arith.constant 0 : i32
    %c0_i32_0 = arith.constant 0 : i32
    %c0_i32_1 = arith.constant 0 : i32
    return %c0_i32, %c0_i32_0 : i32, i32
  }
  func.func @transform_2(%arg0: i32) -> (i32, i32) {
    %c0_i32 = arith.constant 0 : i32
    %c0_i32_0 = arith.constant 0 : i32
    %c0_i32_1 = arith.constant 0 : i32
    return %c0_i32, %c0_i32_0 : i32, i32
  }
  func.func @transform_3(%arg0: i32) -> (i32, i32) {
    %c0_i32 = arith.constant 0 : i32
    %c0_i32_0 = arith.constant 0 : i32
    %c0_i32_1 = arith.constant 0 : i32
    return %c0_i32, %c0_i32_0 : i32, i32
  }
}

</mosaic_0001>

<bundles_post_ra>
// kernel: tpu_custom_call.1
= control target key start
LH: loop header
LB: loop body
LE: loop exit
PB: predicated region body
PF: predicated region fallthrough
CT: control target
= control target key end

     0   :  { %8 = vsyncpa [#allocation3], 0  ;;  %s281_s0 = inlined_call_operand.vmem [shape: bf16[8,36], index: 0, kind: input, shape index: {}]   ;;  %s282_s1 = inlined_call_operand.hbm [shape: bf16[36,128], index: 1, kind: input, shape index: {}]   ;;  %s283_s2 = inlined_call_operand.vmem [shape: f32[8,2], index: 2, kind: input, shape index: {}]   ;;  %s284_s3 = inlined_call_operand.hbm [shape: f32[8,128], index: 3, kind: output, shape index: {}]  }
   0x1   :  { %9 = vsyncpa [#allocation4], 0  ;;  %s240_s12 = smov [#allocation2]  }
   0x2   :  { %s17_s13 = sshll.u32 %s240_s12, 4  ;;  %s18_s13 = int_to_ptr.vmem [resolvable:$true] %s17_s13 }
   0x3   :  { %s204_s14 = scalar_lea.vmem %s18_s13, 320  ;;  %p209_p1 = scmp.lt.s32.totalorder %s18_s13, %s18_s13 }
   0x4   :  { %p205_p0 = scmp.ne.s32.totalorder %s18_s13, %s204_s14  ;;  %p210_p2 = scmp.lt.s32.totalorder %s204_s14, %s204_s14 }
   0x6   :  { %p211_p3 = por %p210_p2, %p209_p1 }
   0x8   :  { %p212_p4 = pnand %p211_p3, %p205_p0 }
   0xa   :  { %215 = shalt.err (!%p212_p4)
}
   0xb   :  { %s241_s15 = smov 64   ;;  %s242_s16 = smov 4  }
   0xc   :  { %23 = dma.hbm_to_vmem [thread:$0]  %s282_s1, 320, %s18_s13, [#allocation3], %s241_s15, %s241_s15, %s242_s16  }
   0xd   :  { %236 = dma.done.wait [#allocation3], 320  }
   0xe   :  { %237 = vsyncadd [#allocation3], 4294966976  ;;  %v243_v0 = vmov 0.0   ;;  %vm244_vm0 = vmmov 0   ;;  %vm55_vm1 = vcmask 1041408   ;;  %v188_v3 = vld [vmem:[#allocation2 + $0x8] sm:$0xff]  }
   0xf   :  { %166 = vmatprep.subr.bf16.mxu0 %v243_v0  ;;  %172 = vmatprep.mubr.msk.bf16.mxu0 %vm244_vm0, %v243_v0  ;;  %v187_v1 = vld [vmem:[#allocation2 + $0x10] ss:$0 sps:$4 sm:$0x33]   ;;  %v189_v4 = vld [vmem:[#allocation2] sm:$0xff]   ;;  %vm51_vm2 = vcmask 293888   ;;  %v245_v11 = vmov 0  }
  0x10   :  { %v57_v2 = vsel %vm55_vm1, %v187_v1, 0  ;;  %v30_v5 = vld [vmem:[%s281_s0] sm:$0xf]  ;;  %185 = vset.pattern.permute.xlu1 %v245_v11  ;;  %v246_v20 = vmov 1   ;;  %s247_s21 = smov 1  }
  0x11   :  { %167 = vmatpush3.bf16.msra.mxu0 %v57_v2  ;;  %186 = vset.pattern.permute.xlu0 %v246_v20  ;;  %v109_v21 = vld [vmem:[%s283_s2] sm:$0xff]  ;;  %s248_s2 = smov [#allocation5]  }
  0x12   :  { %168 = vmatprep.subr.bf16.mxu0 %v243_v0  ;;  %s148_s22 = sshll.u32 %s248_s2, 4  ;;  %s149_s22 = int_to_ptr.vmem [resolvable:$true] %s148_s22 }
  0x13   :  { %s216_s23 = scalar_lea.vmem %s149_s22, 128  ;;  %p221_p6 = scmp.lt.s32.totalorder %s149_s22, %s149_s22 }
  0x14   :  { %p217_p5 = scmp.ne.s32.totalorder %s149_s22, %s216_s23  ;;  %p222_p7 = scmp.lt.s32.totalorder %s216_s23, %s216_s23 }
  0x15   :  { %169 = vmatpush3.bf16.msra.mxu0 %v188_v3 }
  0x16   :  { %170 = vmatprep.subr.bf16.mxu0 %v243_v0  ;;  %p223_p8 = por %p222_p7, %p221_p6 }
  0x18   :  { %p224_p9 = pnand %p223_p8, %p217_p5 }
  0x19   :  { %171 = vmatpush3.bf16.msra.mxu0 %v189_v4 }
  0x1c   :  { %173 = vmatmul.mubr.msk.bf16.vlgmr.msra.gmra.mxu0 %vm51_vm2, %v30_v5 }
  0xdc   :  { %v93_v6 = vpop.f32.mrf.mxu0 }
  0xdd   :  { %99 = vadd.xlane.f32.xlu0 %v93_v6  ;;  %v101_v8 = vmul.f32 %v93_v6, %v93_v6 }
  0xde   :  { %v174_v7 = vpop.f32.mrf.mxu0 }
  0xe0   :  { %v96_v9 = vpop.f32.mrf.mxu0 }
  0xe1   :  { %102 = vadd.xlane.f32.xlu0 %v101_v8 }
  0xe2   :  { %v175_v10 = vpop.f32.mrf.mxu0 }
 0x166   :  { %v100_v12 = vpop.xlane.xlu0 %99 }
 0x167   :  { %v104_v13 = vmul.f32 0.0078125, %v100_v12 }
 0x169   :  { %v106_v15 = vmul.f32 %v104_v13, %v104_v13 }
 0x16a   :  { %v103_v14 = vpop.xlane.xlu0 %102 }
 0x16b   :  { %v105_v16 = vmul.f32 0.0078125, %v103_v14 }
 0x16d   :  { %v107_v17 = vsub.f32 %v105_v16, %v106_v15 }
 0x16f   :  { %v108_v18 = vmax.f32 %v107_v17, 0.0 }
 0x171   :  { %v110_v19 = vadd.f32 1e-05, %v108_v18 }
 0x173   :  { %190 = vrsqrt.f32 %v110_v19 }
 0x180   :  { %v191_v22 = vpop.eup %190 }
 0x181   :  { %v112_v23 = vmul.f32 %v191_v22, %v109_v21 }
 0x183   :  { %v113_v24 = vmul.f32 %v112_v23, %v104_v13 }
 0x185   :  { %115 = vrot.lane.b32.xlu1 %v113_v24, %s247_s21 }
 0x189   :  { %121 = vperm.xlu1 %185, %v112_v23  }
 0x1f7   :  { %v116_v25 = vpop.permute.xlu1 %115 }
 0x1f8   :  { %v118_v26 = vsub.f32 %v109_v21, %v116_v25 }
 0x1fa   :  { %127 = vperm.xlu0 %186, %v118_v26  }
 0x204   :  { %v122_v27 = vpop.permute.xlu1 %121 }
 0x205   :  { %v124_v28 = vmul.f32 %v122_v27, %v93_v6 }
 0x275   :  { %v128_v29 = vpop.permute.xlu0 %127 }
 0x276   :  { %v130_v30 = vadd.f32 %v128_v29, %v124_v28 }
 0x278   :  { %v131_v31 = vmin.f32 %v130_v30, 20.0 }
 0x27a   :  { %v132_v32 = vmul.f32 1.442695, %v131_v31 }
 0x27c   :  { %192 = vpow2.f32 %v132_v32 }
 0x289   :  { %v193_v33 = vpop.eup %192 }
 0x28a   :  { %v134_v34 = vadd.f32 1.0, %v193_v33 }
 0x28c   :  { %v135_v35 = vmul.f32 %v134_v34, %v134_v34 }
 0x28e   :  { %v137_v36 = vadd.f32 1.0, %v135_v35  ;;  %v161_v37 = vadd.f32 -1.0, %v135_v35 }
 0x290   :  { %194 = vrcp.f32 %v137_v36 }
 0x29d   :  { %v195_v38 = vpop.eup %194 }
 0x29e   :  { %v139_v39 = vmul.f32 %v195_v38, %v161_v37 }
 0x2a0   :  { %v140_v40 = vmul.f32 %v139_v39, %v130_v30 }
 0x2a2   :  { %141 = vst [vmem:[#allocation5] sm:$0xff] %v140_v40 }
 0x2a3   :  { %227 = shalt.err (!%p224_p9)
}
 0x2a4   :  { %151 = dma.vmem_to_hbm [thread:$0]  %s149_s22, 128, %s284_s3, [#allocation4]  }
 0x2a5   :  { %238 = dma.done.wait [#allocation4], 128  }
 0x2a6   :  { %239 = vsyncadd [#allocation4], 4294967168 }
 0x2a7   :  { %155 = vsyncpa [#allocation3], 1 }
 0x2a8   :  { %156 = vsyncpa [#allocation4], 1 }

</bundles_post_ra>
